<compile_context>
chip_gen: v7x
topology: tpu7x:2x2x1
jax: 0.10.0
libtpu: 0.0.40
codegen_flags: <defaults>
</compile_context>

<pallas_src>
import functools

import jax
import jax.numpy as jnp
from jax.experimental import pallas as pl
from jax.experimental.pallas import tpu as pltpu

_EPS = 1e-7
_LANE = 128
_ROLL2 = _LANE - 2   # pltpu.roll(x, _ROLL2, 1)[i] == x[(i + 2) % 128]
_ROLL1 = _LANE - 1   # pltpu.roll(x, _ROLL1, 1)[i] == x[(i + 1) % 128]


def _round_up(x, m):
    return ((x + m - 1) // m) * m


def _sublane_quantum(dtype):
    return {4: 8, 2: 16, 1: 32}.get(jnp.dtype(dtype).itemsize, 8)


def _pick_row_tile(B, sub, cap=32):
    """Largest multiple of `sub` (<= cap, <= 32 for vreg pressure) dividing
    round_up(B, sub): zero dead rows except the final sub-quantum rounding."""
    B_r = _round_up(max(B, 1), sub)
    bt = sub
    m = sub
    while m <= min(cap, B_r):
        if B_r % m == 0:
            bt = m
        m += sub
    return bt


def _pick_lane_tile(L, cap):
    """Lane tile: multiple of 128, as large as the cap allows, keeping the
    ragged-edge dead DMA under ~12.5% of the lane extent."""
    L128 = _round_up(max(L, 1), _LANE)
    groups_cap = max(cap // _LANE, 1)
    g = 1
    while g * 2 <= groups_cap:
        g *= 2
    if L128 <= g * _LANE:
        return L128                      # whole lane extent in one tile
    while g > 1:
        lt = g * _LANE
        waste = _round_up(L128, lt) - L128
        if waste * 8 <= L128:
            return lt
        g //= 2
    return _LANE


def _bbox_loss_kernel(pred_ref, tgt_ref, out_ref, *,
                      lane_tile, nb_per, l_true, mask_lanes):
    """pred_ref / tgt_ref: (Bt, lane_tile) blocks of the interleaved (B, 4N)
    boxes.  out_ref: (Bt, 128) f32 lane-partial IoU sums, VMEM-resident across
    the reduction (last grid) axis; the IoU of box k lands at lane 4k mod 128
    of its row, other lane positions hold don't-care values discarded on the
    host via a ::4 slice."""
    c = pl.program_id(0)
    n = pl.program_id(2)
    rows = pred_ref.shape[0]
    groups = lane_tile // _LANE

    @pl.when(n == 0)
    def _init():
        out_ref[...] = jnp.zeros_like(out_ref)

    if mask_lanes:
        # Hoisted once per tile; per group only a scalar sub + compare + select.
        lane = jax.lax.broadcasted_iota(jnp.int32, (rows, _LANE), 1)
        tile_base = (c * nb_per + n) * lane_tile     # logical (unclamped) base

    part = jnp.zeros((rows, _LANE), jnp.float32)

    # Static loop over 128-lane groups: every temporary is a (rows<=32, 128)
    # f32 value that dies at the accumulate, so the whole chain stays
    # vreg-resident (no block-sized VMEM intermediates, no serial lane fold).
    for g in range(groups):
        p = pred_ref[:, pl.ds(g * _LANE, _LANE)].astype(jnp.float32)
        t = tgt_ref[:, pl.ds(g * _LANE, _LANE)].astype(jnp.float32)

        # Interleaved lanes per box k: [x1, y1, x2, y2] at 4k..4k+3.
        # lo[4k]  = max(x1s),  lo[4k+1] = max(y1s)
        # hi[4k+2]= min(x2s),  hi[4k+3] = min(y2s)
        lo = jnp.maximum(p, t)
        hi = jnp.minimum(p, t)
        # shift-by-2 brings min(x2)/min(y2) onto the x1/y1 lanes.
        d = jnp.maximum(pltpu.roll(hi, _ROLL2, 1) - lo, 0.0)
        # d[4k] = iw, d[4k+1] = ih -> inter[4k] = iw * ih
        inter = d * pltpu.roll(d, _ROLL1, 1)

        dp = pltpu.roll(p, _ROLL2, 1) - p            # dp[4k]=pw, dp[4k+1]=ph
        area_p = dp * pltpu.roll(dp, _ROLL1, 1)      # area_p[4k] = pw*ph
        dt = pltpu.roll(t, _ROLL2, 1) - t
        area_t = dt * pltpu.roll(dt, _ROLL1, 1)

        union = area_p + area_t - inter + _EPS
        # Divide on the EUP slot (separate from the 4 VALUs).
        iou = inter * pl.reciprocal(union, approx=True)

        if mask_lanes:
            # Zero lanes past the true 4N extent (ragged lane tile and/or the
            # clamped trailing block of the 2-way reduction split).
            iou = jnp.where(lane < l_true - tile_base - g * _LANE, iou, 0.0)

        part = part + iou

    out_ref[...] += part


def bbox_loss(predictions, targets, *, max_lane_tile=16384):
    """predictions, targets: (B, N, 4) xyxy boxes.  Returns scalar f32 loss."""
    assert predictions.shape == targets.shape
    assert predictions.ndim == 3 and predictions.shape[-1] == 4
    B, N, _ = predictions.shape
    L = 4 * N
    sub = _sublane_quantum(predictions.dtype)

    # Free reshape (row-major collapse of the two minor dims): no transpose,
    # no pad, native dtype kept across the DMA boundary.
    pred = predictions.reshape(B, L)
    tgt = targets.reshape(B, L)

    Bt = _pick_row_tile(B, sub)
    Lt = _pick_lane_tile(L, max_lane_tile)
    Bb = pl.cdiv(B, Bt)
    Nb = pl.cdiv(L, Lt)

    # Megacore (v7x, 2 TCs): guarantee >=2 parallel blocks when possible.  If
    # B fits a single row tile, split the reduction range into 2 chunks that
    # accumulate into separate output slabs summed on the host.
    C = 2 if (Bb == 1 and Nb >= 2) else 1
    Nb_per = pl.cdiv(Nb, C)
    mask_lanes = (C * Nb_per * Lt != L)

    kernel = functools.partial(
        _bbox_loss_kernel, lane_tile=Lt, nb_per=Nb_per, l_true=L,
        mask_lanes=mask_lanes)

    def in_map(c, b, n):
        # Clamp so a possible trailing logical block (odd Nb, C == 2) reads a
        # valid block; the in-kernel lane mask (driven by the *logical* index)
        # zeroes its contribution, so nothing is double counted.
        return (b, jnp.minimum(c * Nb_per + n, Nb - 1))

    lane_sums = pl.pallas_call(
        kernel,
        out_shape=jax.ShapeDtypeStruct((C * Bb * Bt, _LANE), jnp.float32),
        grid=(C, Bb, Nb_per),
        in_specs=[
            pl.BlockSpec((Bt, Lt), in_map),
            pl.BlockSpec((Bt, Lt), in_map),
        ],
        out_specs=pl.BlockSpec((Bt, _LANE), lambda c, b, n: (c * Bb + b, 0)),
        compiler_params=pltpu.CompilerParams(
            dimension_semantics=("parallel", "parallel", "arbitrary"),
            vmem_limit_bytes=32 * 1024 * 1024),
    )(pred, tgt)

    # Valid IoUs live at lanes 0 mod 4 of rows < B; ragged rows / don't-care
    # lanes are discarded here (tiny host-side slice of a (C*Bb*Bt,128) slab).
    iou_sum = jnp.sum(lane_sums.reshape(C, Bb * Bt, _LANE)[:, :B, 0::4])
    # loss = sum_b (1 - mean_n iou_bn) = B - (sum iou) / N
    return jnp.float32(B) - iou_sum / jnp.float32(N)


def _bbox_loss_ref(predictions, targets):
    """Pure-JAX reference mirroring the PyTorch forward."""
    p = predictions.astype(jnp.float32)
    t = targets.astype(jnp.float32)
    b1_x1, b1_y1, b1_x2, b1_y2 = p[..., 0], p[..., 1], p[..., 2], p[..., 3]
    b2_x1, b2_y1, b2_x2, b2_y2 = t[..., 0], t[..., 1], t[..., 2], t[..., 3]
    inter = jnp.clip(jnp.minimum(b1_x2, b2_x2) - jnp.maximum(b1_x1, b2_x1), 0) * \
            jnp.clip(jnp.minimum(b1_y2, b2_y2) - jnp.maximum(b1_y1, b2_y1), 0)
    union = (b1_x2 - b1_x1) * (b1_y2 - b1_y1) + \
            (b2_x2 - b2_x1) * (b2_y2 - b2_y1) - inter + _EPS
    iou = inter / union
    return jnp.sum(1.0 - jnp.mean(iou, axis=1), axis=0)


def _make_boxes(key, shape):
    """Deterministic well-formed xyxy boxes of shape (B, N, 4)."""
    k1, k2 = jax.random.split(key)
    xy1 = jax.random.uniform(k1, shape[:-1] + (2,), minval=0.0, maxval=10.0)
    wh = jax.random.uniform(k2, shape[:-1] + (2,), minval=0.5, maxval=5.0)
    return jnp.concatenate([xy1, xy1 + wh], axis=-1).astype(jnp.float32)


if __name__ == "__main__":
    key = jax.random.PRNGKey(0)
    loss_fn = jax.jit(bbox_loss, static_argnames=("max_lane_tile",))

    # (B, N), dtype, max_lane_tile (small cap exercises the multi-tile paths)
    cases = [
        ((2, 8), jnp.float32, 16384),    # tiny: ragged rows + ragged lane tile
        ((40, 100), jnp.float32, 256),   # 5 parallel row blocks, 2-step reduction
        ((4, 160), jnp.float32, 256),    # 2-way reduction split, odd Nb (clamp path)
        ((16, 192), jnp.bfloat16, 16384),  # bf16 across the DMA, exact tile fit
    ]
    for (B, N), dt, cap in cases:
        key, kp, kt = jax.random.split(key, 3)
        predictions = _make_boxes(kp, (B, N, 4)).astype(dt)
        targets = _make_boxes(kt, (B, N, 4)).astype(dt)

        loss = jax.block_until_ready(loss_fn(predictions, targets, max_lane_tile=cap))
        ref = jax.block_until_ready(_bbox_loss_ref(predictions, targets))
        # approx reciprocal (EUP) + reassociated reduction => not bitwise equal.
        assert jnp.allclose(loss, ref, rtol=5e-3, atol=5e-3), (B, N, dt, loss, ref)

    print("KERNEL_OK")
</pallas_src>

<mosaic_0001>
module attributes {stable_mosaic.version = 11 : i64} {
  func.func @_bbox_loss_kernel(%arg0: i32, %arg1: i32, %arg2: i32, %arg3: memref<8x128xf32, #tpu.memory_space<vmem>>, %arg4: memref<8x128xf32, #tpu.memory_space<vmem>>, %arg5: memref<8x128xf32, #tpu.memory_space<vmem>>) attributes {dimension_semantics = [#tpu.dimension_semantics<parallel>, #tpu.dimension_semantics<parallel>, #tpu.dimension_semantics<arbitrary>], iteration_bounds = array<i64: 1, 1, 1>, scalar_prefetch = 0 : i64, scratch_operands = 0 : i64, tpu.core_type = #tpu.core_type<tc>, window_params = [{transform_indices = @transform_0, window_bounds = array<i64: 8, 128>}, {transform_indices = @transform_1, window_bounds = array<i64: 8, 128>}, {transform_indices = @transform_2, window_bounds = array<i64: 8, 128>}]} {
    %c0_i32 = arith.constant 0 : i32
    %0 = arith.cmpi eq, %arg2, %c0_i32 : i32
    %1 = arith.extui %0 : i1 to i32
    %c0_i32_0 = arith.constant 0 : i32
    %2 = arith.cmpi ne, %1, %c0_i32_0 : i32
    scf.if %2 {
      %cst_16 = arith.constant 0.000000e+00 : f32
      %42 = vector.broadcast %cst_16 : f32 to vector<8x128xf32>
      %c0_17 = arith.constant 0 : index
      %c0_18 = arith.constant 0 : index
      %43 = vector.load %arg5[%c0_17, %c0_18] : memref<8x128xf32, #tpu.memory_space<vmem>>, vector<8x128xf32>
      tpu.vector_store %arg5[%c0_17, %c0_18], %42 {strides = array<i32>} : memref<8x128xf32, #tpu.memory_space<vmem>>, vector<8x128xf32>,
    } else {
    }
    %3 = tpu.iota {dimensions = array<i32: 1>} : vector<8x128xi32>
    %c1_i32 = arith.constant 1 : i32
    %4 = arith.muli %arg0, %c1_i32 : i32
    %5 = arith.addi %4, %arg2 : i32
    %c128_i32 = arith.constant 128 : i32
    %6 = arith.muli %5, %c128_i32 : i32
    %cst = arith.constant 0.000000e+00 : f32
    %7 = vector.broadcast %cst : f32 to vector<8x128xf32>
    %c0 = arith.constant 0 : index
    %c0_1 = arith.constant 0 : index
    %8 = vector.load %arg3[%c0, %c0_1] : memref<8x128xf32, #tpu.memory_space<vmem>>, vector<8x128xf32>
    %c0_2 = arith.constant 0 : index
    %c0_3 = arith.constant 0 : index
    %9 = vector.load %arg4[%c0_2, %c0_3] : memref<8x128xf32, #tpu.memory_space<vmem>>, vector<8x128xf32>
    %10 = arith.maximumf %8, %9 : vector<8x128xf32>
    %11 = arith.minimumf %8, %9 : vector<8x128xf32>
    %c126_i32 = arith.constant 126 : i32
    %12 = tpu.dynamic_rotate %11 by %c126_i32 dim 1 : vector<8x128xf32>, i32 -> vector<8x128xf32>
    %13 = arith.subf %12, %10 : vector<8x128xf32>
    %cst_4 = arith.constant 0.000000e+00 : f32
    %14 = vector.broadcast %cst_4 : f32 to vector<8x128xf32>
    %15 = arith.maximumf %13, %14 : vector<8x128xf32>
    %c127_i32 = arith.constant 127 : i32
    %16 = tpu.dynamic_rotate %15 by %c127_i32 dim 1 : vector<8x128xf32>, i32 -> vector<8x128xf32>
    %17 = arith.mulf %15, %16 : vector<8x128xf32>
    %c126_i32_5 = arith.constant 126 : i32
    %18 = tpu.dynamic_rotate %8 by %c126_i32_5 dim 1 : vector<8x128xf32>, i32 -> vector<8x128xf32>
    %19 = arith.subf %18, %8 : vector<8x128xf32>
    %c127_i32_6 = arith.constant 127 : i32
    %20 = tpu.dynamic_rotate %19 by %c127_i32_6 dim 1 : vector<8x128xf32>, i32 -> vector<8x128xf32>
    %21 = arith.mulf %19, %20 : vector<8x128xf32>
    %c126_i32_7 = arith.constant 126 : i32
    %22 = tpu.dynamic_rotate %9 by %c126_i32_7 dim 1 : vector<8x128xf32>, i32 -> vector<8x128xf32>
    %23 = arith.subf %22, %9 : vector<8x128xf32>
    %c127_i32_8 = arith.constant 127 : i32
    %24 = tpu.dynamic_rotate %23 by %c127_i32_8 dim 1 : vector<8x128xf32>, i32 -> vector<8x128xf32>
    %25 = arith.mulf %23, %24 : vector<8x128xf32>
    %26 = arith.addf %21, %25 : vector<8x128xf32>
    %27 = arith.subf %26, %17 : vector<8x128xf32>
    %cst_9 = arith.constant 1.000000e-07 : f32
    %28 = vector.broadcast %cst_9 : f32 to vector<8x128xf32>
    %29 = arith.addf %27, %28 : vector<8x128xf32>
    %30 = tpu.reciprocal %29 {approx = true} : vector<8x128xf32> -> vector<8x128xf32>
    %31 = arith.mulf %17, %30 : vector<8x128xf32>
    %c32_i32 = arith.constant 32 : i32
    %32 = arith.subi %c32_i32, %6 : i32
    %c0_i32_10 = arith.constant 0 : i32
    %33 = arith.subi %32, %c0_i32_10 : i32
    %34 = vector.broadcast %33 : i32 to vector<8x128xi32>
    %35 = arith.cmpi slt, %3, %34 : vector<8x128xi32>
    %cst_11 = arith.constant 0.000000e+00 : f32
    %36 = vector.broadcast %cst_11 : f32 to vector<8x128xf32>
    %37 = arith.select %35, %31, %36 : vector<8x128xi1>, vector<8x128xf32>
    %38 = arith.addf %7, %37 : vector<8x128xf32>
    %c0_12 = arith.constant 0 : index
    %c0_13 = arith.constant 0 : index
    %39 = vector.load %arg5[%c0_12, %c0_13] : memref<8x128xf32, #tpu.memory_space<vmem>>, vector<8x128xf32>
    %40 = arith.addf %39, %38 : vector<8x128xf32>
    %c0_14 = arith.constant 0 : index
    %c0_15 = arith.constant 0 : index
    %41 = vector.load %arg5[%c0_14, %c0_15] : memref<8x128xf32, #tpu.memory_space<vmem>>, vector<8x128xf32>
    tpu.vector_store %arg5[%c0_14, %c0_15], %40 {strides = array<i32>} : memref<8x128xf32, #tpu.memory_space<vmem>>, vector<8x128xf32>,
    return
  }
  func.func @transform_0(%arg0: i32, %arg1: i32, %arg2: i32) -> (i32, i32) {
    %c1_i32 = arith.constant 1 : i32
    %0 = arith.muli %arg0, %c1_i32 : i32
    %1 = arith.addi %0, %arg2 : i32
    %c0_i32 = arith.constant 0 : i32
    %2 = arith.minsi %1, %c0_i32 : i32
    %c0_i32_0 = arith.constant 0 : i32
    return %arg1, %2 : i32, i32
  }
  func.func @transform_1(%arg0: i32, %arg1: i32, %arg2: i32) -> (i32, i32) {
    %c1_i32 = arith.constant 1 : i32
    %0 = arith.muli %arg0, %c1_i32 : i32
    %1 = arith.addi %0, %arg2 : i32
    %c0_i32 = arith.constant 0 : i32
    %2 = arith.minsi %1, %c0_i32 : i32
    %c0_i32_0 = arith.constant 0 : i32
    return %arg1, %2 : i32, i32
  }
  func.func @transform_2(%arg0: i32, %arg1: i32, %arg2: i32) -> (i32, i32) {
    %c1_i32 = arith.constant 1 : i32
    %0 = arith.muli %arg0, %c1_i32 : i32
    %1 = arith.addi %0, %arg1 : i32
    %c0_i32 = arith.constant 0 : i32
    %c0_i32_0 = arith.constant 0 : i32
    return %1, %c0_i32 : i32, i32
  }
}

</mosaic_0001>

<bundles_post_ra>
// kernel: bbox_loss.1
= control target key start
LH: loop header
LB: loop body
LE: loop exit
PB: predicated region body
PF: predicated region fallthrough
CT: control target
= control target key end

     0   :  { %s161_s13 = smov 126   ;;  %s162_s14 = smov 127   ;;  %v81_v20 = vlaneseq  ;;  %s187_s1 = inlined_call_operand.vmem [shape: f32[2,32], index: 1, kind: input, shape index: {}]   ;;  %s188_s0 = inlined_call_operand.vmem [shape: f32[2,32], index: 0, kind: input, shape index: {}]   ;;  %s189_s2 = inlined_call_operand.vmem [shape: f32[8,128], index: 2, kind: output, shape index: {}]  }
   0x1   :  { %v86_v0 = vld [vmem:[%s187_s1] sm:$0xff] }
   0x2   :  { %v85_v1 = vld [vmem:[%s188_s0] sm:$0xff]  ;;  %102 = vrot.lane.b32.xlu1 %v86_v0, %s161_s13  ;;  %v82_v21 = vand.u32 127, %v81_v20 }
   0x3   :  { %v88_v2 = vmin.f32 %v85_v1, %v86_v0  ;;  %v87_v6 = vmax.f32 %v85_v1, %v86_v0 }
   0x4   :  { %vm115_vm0 = vcmp.lt.s32.totalorder %v82_v21, 32 }
   0x5   :  { %89 = vrot.lane.b32.xlu0 %v88_v2, %s161_s13 }
   0x9   :  { %96 = vrot.lane.b32.xlu0 %v85_v1, %s161_s13 }
  0x74   :  { %v103_v3 = vpop.permute.xlu1 %102 }
  0x75   :  { %v104_v4 = vsub.f32 %v103_v3, %v86_v0 }
  0x77   :  { %v90_v5 = vpop.permute.xlu0 %89  ;;  %105 = vrot.lane.b32.xlu0 %v104_v4, %s162_s14 }
  0x78   :  { %v91_v8 = vsub.f32 %v90_v5, %v87_v6 }
  0x7a   :  { %v92_v10 = vmax.f32 %v91_v8, 0.0 }
  0x7b   :  { %v97_v7 = vpop.permute.xlu0 %96 }
  0x7c   :  { %v98_v9 = vsub.f32 %v97_v7, %v85_v1 }
  0x7e   :  { %99 = vrot.lane.b32.xlu1 %v98_v9, %s162_s14 }
  0x82   :  { %93 = vrot.lane.b32.xlu1 %v92_v10, %s162_s14 }
  0xe9   :  { %v106_v11 = vpop.permute.xlu0 %105 }
  0xea   :  { %v107_v14 = vmul.f32 %v106_v11, %v104_v4 }
  0xf0   :  { %v100_v12 = vpop.permute.xlu1 %99 }
  0xf1   :  { %v101_v13 = vmul.f32 %v100_v12, %v98_v9 }
  0xf3   :  { %v108_v16 = vadd.f32 %v107_v14, %v101_v13 }
  0xf4   :  { %v94_v15 = vpop.permute.xlu1 %93 }
  0xf5   :  { %v95_v17 = vmul.f32 %v94_v15, %v92_v10 }
  0xf7   :  { %v109_v18 = vsub.f32 %v108_v16, %v95_v17 }
  0xf9   :  { %v110_v19 = vadd.f32 1e-07, %v109_v18 }
  0xfb   :  { %159 = vrcp.f32 %v110_v19 }
 0x105   :  { %v160_v22 = vpop.eup %159 }
 0x106   :  { %v112_v23 = vmul.f32 %v160_v22, %v95_v17 }
 0x108   :  { %v116_v24 = vsel %vm115_vm0, %v112_v23, 0.0 }
 0x109   :  { %120 = vst [vmem:[%s189_s2] sm:$0xff] %v116_v24 }

</bundles_post_ra>
